<compile_context>
chip_gen: v5e
topology: v5e:2x2
jax: 0.10.0
libtpu: 0.0.40
codegen_flags: <defaults>
</compile_context>

<pallas_src>
import functools

import jax
import jax.numpy as jnp
from jax.experimental import pallas as pl
from jax.experimental.pallas import tpu as pltpu

LANE = 128  # internal activation / weight lane width (one MXU tile)


def _round_up(x, m):
    return ((x + m - 1) // m) * m


def _resnet_controller_kernel(
    x_ref,
    w1_ref, b1_ref,
    w2_ref, b2_ref,
    w3_ref, b3_ref,
    w4_ref, b4_ref,
    o_ref,
    xpad_ref,
):
    """Whole forward pass fused in one kernel.

    x_ref:  (tile_b, nx)  f32   -- unpadded input tile straight from HBM
    w*_ref: (128, 128)    bf16  -- zero-padded weights, VMEM-resident
    b*_ref: (1, 128)      f32   -- zero-padded biases
    o_ref:  (tile_b, nu)  f32   -- only the real nu lanes go back to HBM
    xpad_ref: (tile_b, 128) f32 VMEM scratch for the lane-extended activation
    """
    nx = x_ref.shape[-1]
    nu = o_ref.shape[-1]
    bf16 = jnp.bfloat16

    # Zero-extend the input tile to a lane-dense (tile_b, 128) activation.
    # Padding lanes MUST be zero: the residual add and the zero-padded weight
    # rows rely on that invariant for exactness.
    xpad_ref[...] = jnp.zeros_like(xpad_ref)
    xpad_ref[:, :nx] = x_ref[...]
    x = xpad_ref[...]                                            # (tb,128) f32

    # net_1: Linear(nx, 64) -> ReLU -> Linear(64, nx), then residual add.
    h1 = jnp.dot(x.astype(bf16), w1_ref[...],
                 preferred_element_type=jnp.float32) + b1_ref[...]
    h1 = jnp.maximum(h1, 0.0)
    y1 = jnp.dot(h1.astype(bf16), w2_ref[...],
                 preferred_element_type=jnp.float32) + b2_ref[...]
    y1 = y1 + x  # padded lanes of x and of (W2, b2) columns are zero => exact

    # net_2: Linear(nx, 32) -> ReLU -> Linear(32, nu).
    h2 = jnp.dot(y1.astype(bf16), w3_ref[...],
                 preferred_element_type=jnp.float32) + b3_ref[...]
    h2 = jnp.maximum(h2, 0.0)
    out = jnp.dot(h2.astype(bf16), w4_ref[...],
                  preferred_element_type=jnp.float32) + b4_ref[...]

    # Narrow store: only the real nu output lanes are written to HBM.
    o_ref[...] = out[:, :nu].astype(o_ref.dtype)


def _pad_weight(w):
    """(fan_in, fan_out) f32 -> (128, 128) bf16, zero-padded."""
    fi, fo = w.shape
    wp = jnp.zeros((LANE, LANE), jnp.float32).at[:fi, :fo].set(w)
    return wp.astype(jnp.bfloat16)


def _pad_bias(b):
    """(1, fan_out) f32 -> (1, 128) f32, zero-padded."""
    fo = b.shape[-1]
    return jnp.zeros((1, LANE), jnp.float32).at[:, :fo].set(b.reshape(1, fo))


def prepare_params(params):
    """One-time pad + bf16 cast of parameters into clean 128x128 MXU tiles.

    Call once at init (or whenever params change) and reuse the result for
    every forward call -- keeps these tiny pad/cast ops off the hot path.
    """
    return dict(
        w1=_pad_weight(params["w1"]), b1=_pad_bias(params["b1"]),
        w2=_pad_weight(params["w2"]), b2=_pad_bias(params["b2"]),
        w3=_pad_weight(params["w3"]), b3=_pad_bias(params["b3"]),
        w4=_pad_weight(params["w4"]), b4=_pad_bias(params["b4"]),
    )


@functools.partial(jax.jit, static_argnames=("nu", "block_b"))
def resnet_controller_forward(x, padded_params, *, nu, block_b=1024):
    """x: (B, nx) float32.  padded_params: output of prepare_params()."""
    B, nx = x.shape
    assert nx <= LANE and nu <= LANE, "feature dims must fit in one lane tile"

    # Batch tiling:
    #   * small batches (the realistic controller case) -> one grid step,
    #     no per-step pipeline overhead;
    #   * >= 512 rows -> 2-way split so v7x's two TensorCores each get
    #     >= 256 rows of work (harmless amortized overhead on v5e/v6e);
    #   * > block_b rows -> natural multi-step tiling.
    b_pad = _round_up(B, 8)
    tile_b = min(block_b, b_pad)
    if tile_b == b_pad and b_pad >= 512:
        tile_b = _round_up((b_pad + 1) // 2, 8)
    b_pad = _round_up(b_pad, tile_b)
    grid = (b_pad // tile_b,)

    # Only pad the batch (sublane dim) when it is not already tile-divisible;
    # no lane padding of the input in HBM.
    x_in = x if b_pad == B else jnp.zeros((b_pad, nx), x.dtype).at[:B].set(x)

    def const_spec(shape):
        # Small constant parameter tensor, VMEM-resident across all grid steps.
        return pl.BlockSpec(shape, lambda i: (0, 0))

    compiler_params = pltpu.CompilerParams(
        dimension_semantics=("parallel",),
        # Only needed for very large tiles (v5e default scoped VMEM is 16 MiB).
        vmem_limit_bytes=(48 << 20) if tile_b >= 2048 else None,
    )

    out = pl.pallas_call(
        _resnet_controller_kernel,
        out_shape=jax.ShapeDtypeStruct((b_pad, nu), x.dtype),
        grid_spec=pltpu.PrefetchScalarGridSpec(
            num_scalar_prefetch=0,
            grid=grid,
            in_specs=[
                pl.BlockSpec((tile_b, nx), lambda i: (i, 0)),     # x tile (unpadded lanes)
                const_spec((LANE, LANE)), const_spec((1, LANE)),  # w1, b1
                const_spec((LANE, LANE)), const_spec((1, LANE)),  # w2, b2
                const_spec((LANE, LANE)), const_spec((1, LANE)),  # w3, b3
                const_spec((LANE, LANE)), const_spec((1, LANE)),  # w4, b4
            ],
            out_specs=pl.BlockSpec((tile_b, nu), lambda i: (i, 0)),
            scratch_shapes=[pltpu.VMEM((tile_b, LANE), jnp.float32)],
        ),
        compiler_params=compiler_params,
    )(x_in,
      padded_params["w1"], padded_params["b1"],
      padded_params["w2"], padded_params["b2"],
      padded_params["w3"], padded_params["b3"],
      padded_params["w4"], padded_params["b4"])

    return out[:B]


def init_params(key, nx, nu):
    """Deterministic init mirroring PyTorch nn.Linear default (U[-1/sqrt(fan_in), ...])."""
    dims = [
        ("w1", "b1", nx, 64),
        ("w2", "b2", 64, nx),
        ("w3", "b3", nx, 32),
        ("w4", "b4", 32, nu),
    ]
    params = {}
    for wname, bname, fan_in, fan_out in dims:
        key, kw, kb = jax.random.split(key, 3)
        bound = 1.0 / jnp.sqrt(fan_in)
        params[wname] = jax.random.uniform(
            kw, (fan_in, fan_out), jnp.float32, -bound, bound)
        params[bname] = jax.random.uniform(
            kb, (1, fan_out), jnp.float32, -bound, bound)
    return params


def reference_forward_f32(x, params):
    """Pure-f32 JAX reference matching the PyTorch module semantics."""
    h1 = jnp.maximum(x @ params["w1"] + params["b1"], 0.0)
    y1 = h1 @ params["w2"] + params["b2"] + x
    h2 = jnp.maximum(y1 @ params["w3"] + params["b3"], 0.0)
    return h2 @ params["w4"] + params["b4"]


def reference_forward_bf16(x, params):
    """Reference with the kernel's numerics (bf16 MXU operands, f32 acc)."""
    bf = jnp.bfloat16

    def dot(a, w):
        return jnp.dot(a.astype(bf), w.astype(bf),
                       preferred_element_type=jnp.float32)

    h1 = jnp.maximum(dot(x, params["w1"]) + params["b1"], 0.0)
    y1 = dot(h1, params["w2"]) + params["b2"] + x
    h2 = jnp.maximum(dot(y1, params["w3"]) + params["b3"], 0.0)
    return dot(h2, params["w4"]) + params["b4"]


if __name__ == "__main__":
    nx, nu = 32, 8
    batch = 16

    key = jax.random.PRNGKey(0)
    key, kx = jax.random.split(key)
    x = jax.random.normal(kx, (batch, nx), jnp.float32)
    params = init_params(key, nx, nu)

    # One-time parameter preparation (hoisted out of the per-call hot path).
    padded = prepare_params(params)
    padded = jax.tree_util.tree_map(jax.block_until_ready, padded)

    out = resnet_controller_forward(x, padded, nu=nu)
    out = jax.block_until_ready(out)
    assert out.shape == (batch, nu), out.shape

    # Tight check against a reference that uses the same bf16 MXU numerics.
    ref_bf16 = reference_forward_bf16(x, params)
    assert jnp.allclose(out, ref_bf16, atol=1e-3, rtol=1e-3), (
        float(jnp.max(jnp.abs(out - ref_bf16))))

    # Loose check against the exact f32 module semantics
    # (residual path is re-cast to bf16 before the third matmul, so some
    #  precision loss vs. the pure-f32 reference is expected).
    ref_f32 = reference_forward_f32(x, params)
    assert jnp.allclose(out, ref_f32, atol=5e-2, rtol=5e-2), (
        float(jnp.max(jnp.abs(out - ref_f32))))

    print("KERNEL_OK")
</pallas_src>

<mosaic_0001>
module attributes {stable_mosaic.version = 11 : i64} {
  func.func @_resnet_controller_kernel(%arg0: i32, %arg1: memref<16x32xf32, #tpu.memory_space<vmem>>, %arg2: memref<128x128xbf16, #tpu.memory_space<vmem>>, %arg3: memref<1x128xf32, #tpu.memory_space<vmem>>, %arg4: memref<128x128xbf16, #tpu.memory_space<vmem>>, %arg5: memref<1x128xf32, #tpu.memory_space<vmem>>, %arg6: memref<128x128xbf16, #tpu.memory_space<vmem>>, %arg7: memref<1x128xf32, #tpu.memory_space<vmem>>, %arg8: memref<128x128xbf16, #tpu.memory_space<vmem>>, %arg9: memref<1x128xf32, #tpu.memory_space<vmem>>, %arg10: memref<16x8xf32, #tpu.memory_space<vmem>>, %arg11: memref<16x128xf32, #tpu.memory_space<vmem>>) attributes {dimension_semantics = [#tpu.dimension_semantics<parallel>], iteration_bounds = array<i64: 1>, scalar_prefetch = 0 : i64, scratch_operands = 1 : i64, tpu.core_type = #tpu.core_type<tc>, window_params = [{transform_indices = @transform_0, window_bounds = array<i64: 16, 32>}, {pipeline_mode = #tpu.pipeline_mode<synchronous>, transform_indices = @transform_1, window_bounds = array<i64: 128, 128>}, {pipeline_mode = #tpu.pipeline_mode<synchronous>, transform_indices = @transform_2, window_bounds = array<i64: 1, 128>}, {pipeline_mode = #tpu.pipeline_mode<synchronous>, transform_indices = @transform_3, window_bounds = array<i64: 128, 128>}, {pipeline_mode = #tpu.pipeline_mode<synchronous>, transform_indices = @transform_4, window_bounds = array<i64: 1, 128>}, {pipeline_mode = #tpu.pipeline_mode<synchronous>, transform_indices = @transform_5, window_bounds = array<i64: 128, 128>}, {pipeline_mode = #tpu.pipeline_mode<synchronous>, transform_indices = @transform_6, window_bounds = array<i64: 1, 128>}, {pipeline_mode = #tpu.pipeline_mode<synchronous>, transform_indices = @transform_7, window_bounds = array<i64: 128, 128>}, {pipeline_mode = #tpu.pipeline_mode<synchronous>, transform_indices = @transform_8, window_bounds = array<i64: 1, 128>}, {transform_indices = @transform_9, window_bounds = array<i64: 16, 8>}]} {
    %cst = arith.constant 0.000000e+00 : f32
    %0 = vector.broadcast %cst : f32 to vector<16x128xf32>
    %c0 = arith.constant 0 : index
    %c0_0 = arith.constant 0 : index
    %1 = vector.load %arg11[%c0, %c0_0] : memref<16x128xf32, #tpu.memory_space<vmem>>, vector<16x128xf32>
    tpu.vector_store %arg11[%c0, %c0_0], %0 {strides = array<i32>} : memref<16x128xf32, #tpu.memory_space<vmem>>, vector<16x128xf32>,
    %c0_1 = arith.constant 0 : index
    %c0_2 = arith.constant 0 : index
    %2 = vector.load %arg1[%c0_1, %c0_2] : memref<16x32xf32, #tpu.memory_space<vmem>>, vector<16x32xf32>
    %c0_3 = arith.constant 0 : index
    %c0_4 = arith.constant 0 : index
    %3 = vector.load %arg11[%c0_3, %c0_4] : memref<16x128xf32, #tpu.memory_space<vmem>>, vector<16x32xf32>
    tpu.vector_store %arg11[%c0_3, %c0_4], %2 {strides = array<i32>} : memref<16x128xf32, #tpu.memory_space<vmem>>, vector<16x32xf32>,
    %c0_5 = arith.constant 0 : index
    %c0_6 = arith.constant 0 : index
    %4 = vector.load %arg11[%c0_5, %c0_6] : memref<16x128xf32, #tpu.memory_space<vmem>>, vector<16x128xf32>
    %5 = arith.truncf %4 : vector<16x128xf32> to vector<16x128xbf16>
    %c0_7 = arith.constant 0 : index
    %c0_8 = arith.constant 0 : index
    %6 = vector.load %arg2[%c0_7, %c0_8] : memref<128x128xbf16, #tpu.memory_space<vmem>>, vector<128x128xbf16>
    %cst_9 = arith.constant dense<0.000000e+00> : vector<16x128xf32>
    %7 = tpu.matmul %5, %6, %cst_9 {dimension_numbers = #tpu.dot_dimension_numbers<[1], [0], [0], [1], [0, 0, 1, 1], [], []>} : vector<16x128xbf16>, vector<128x128xbf16>, vector<16x128xf32> -> vector<16x128xf32>
    %c0_10 = arith.constant 0 : index
    %c0_11 = arith.constant 0 : index
    %8 = vector.load %arg3[%c0_10, %c0_11] : memref<1x128xf32, #tpu.memory_space<vmem>>, vector<1x128xf32>
    %9 = vector.broadcast %8 : vector<1x128xf32> to vector<16x128xf32>
    %10 = arith.addf %7, %9 : vector<16x128xf32>
    %cst_12 = arith.constant 0.000000e+00 : f32
    %11 = vector.broadcast %cst_12 : f32 to vector<16x128xf32>
    %12 = arith.maximumf %10, %11 : vector<16x128xf32>
    %13 = arith.truncf %12 : vector<16x128xf32> to vector<16x128xbf16>
    %c0_13 = arith.constant 0 : index
    %c0_14 = arith.constant 0 : index
    %14 = vector.load %arg4[%c0_13, %c0_14] : memref<128x128xbf16, #tpu.memory_space<vmem>>, vector<128x128xbf16>
    %cst_15 = arith.constant dense<0.000000e+00> : vector<16x128xf32>
    %15 = tpu.matmul %13, %14, %cst_15 {dimension_numbers = #tpu.dot_dimension_numbers<[1], [0], [0], [1], [0, 0, 1, 1], [], []>} : vector<16x128xbf16>, vector<128x128xbf16>, vector<16x128xf32> -> vector<16x128xf32>
    %c0_16 = arith.constant 0 : index
    %c0_17 = arith.constant 0 : index
    %16 = vector.load %arg5[%c0_16, %c0_17] : memref<1x128xf32, #tpu.memory_space<vmem>>, vector<1x128xf32>
    %17 = vector.broadcast %16 : vector<1x128xf32> to vector<16x128xf32>
    %18 = arith.addf %15, %17 : vector<16x128xf32>
    %19 = arith.addf %18, %4 : vector<16x128xf32>
    %20 = arith.truncf %19 : vector<16x128xf32> to vector<16x128xbf16>
    %c0_18 = arith.constant 0 : index
    %c0_19 = arith.constant 0 : index
    %21 = vector.load %arg6[%c0_18, %c0_19] : memref<128x128xbf16, #tpu.memory_space<vmem>>, vector<128x128xbf16>
    %cst_20 = arith.constant dense<0.000000e+00> : vector<16x128xf32>
    %22 = tpu.matmul %20, %21, %cst_20 {dimension_numbers = #tpu.dot_dimension_numbers<[1], [0], [0], [1], [0, 0, 1, 1], [], []>} : vector<16x128xbf16>, vector<128x128xbf16>, vector<16x128xf32> -> vector<16x128xf32>
    %c0_21 = arith.constant 0 : index
    %c0_22 = arith.constant 0 : index
    %23 = vector.load %arg7[%c0_21, %c0_22] : memref<1x128xf32, #tpu.memory_space<vmem>>, vector<1x128xf32>
    %24 = vector.broadcast %23 : vector<1x128xf32> to vector<16x128xf32>
    %25 = arith.addf %22, %24 : vector<16x128xf32>
    %cst_23 = arith.constant 0.000000e+00 : f32
    %26 = vector.broadcast %cst_23 : f32 to vector<16x128xf32>
    %27 = arith.maximumf %25, %26 : vector<16x128xf32>
    %28 = arith.truncf %27 : vector<16x128xf32> to vector<16x128xbf16>
    %c0_24 = arith.constant 0 : index
    %c0_25 = arith.constant 0 : index
    %29 = vector.load %arg8[%c0_24, %c0_25] : memref<128x128xbf16, #tpu.memory_space<vmem>>, vector<128x128xbf16>
    %cst_26 = arith.constant dense<0.000000e+00> : vector<16x128xf32>
    %30 = tpu.matmul %28, %29, %cst_26 {dimension_numbers = #tpu.dot_dimension_numbers<[1], [0], [0], [1], [0, 0, 1, 1], [], []>} : vector<16x128xbf16>, vector<128x128xbf16>, vector<16x128xf32> -> vector<16x128xf32>
    %c0_27 = arith.constant 0 : index
    %c0_28 = arith.constant 0 : index
    %31 = vector.load %arg9[%c0_27, %c0_28] : memref<1x128xf32, #tpu.memory_space<vmem>>, vector<1x128xf32>
    %32 = vector.broadcast %31 : vector<1x128xf32> to vector<16x128xf32>
    %33 = arith.addf %30, %32 : vector<16x128xf32>
    %34 = vector.extract_strided_slice %33 {offsets = [0, 0], sizes = [16, 8], strides = [1, 1]} : vector<16x128xf32> to vector<16x8xf32>
    %c0_29 = arith.constant 0 : index
    %c0_30 = arith.constant 0 : index
    %35 = vector.load %arg10[%c0_29, %c0_30] : memref<16x8xf32, #tpu.memory_space<vmem>>, vector<16x8xf32>
    tpu.vector_store %arg10[%c0_29, %c0_30], %34 {strides = array<i32>} : memref<16x8xf32, #tpu.memory_space<vmem>>, vector<16x8xf32>,
    return
  }
  func.func @transform_0(%arg0: i32) -> (i32, i32) {
    %c0_i32 = arith.constant 0 : i32
    %c0_i32_0 = arith.constant 0 : i32
    return %arg0, %c0_i32 : i32, i32
  }
  func.func @transform_1(%arg0: i32) -> (i32, i32) {
    %c0_i32 = arith.constant 0 : i32
    %c0_i32_0 = arith.constant 0 : i32
    %c0_i32_1 = arith.constant 0 : i32
    return %c0_i32, %c0_i32_0 : i32, i32
  }
  func.func @transform_2(%arg0: i32) -> (i32, i32) {
    %c0_i32 = arith.constant 0 : i32
    %c0_i32_0 = arith.constant 0 : i32
    %c0_i32_1 = arith.constant 0 : i32
    return %c0_i32, %c0_i32_0 : i32, i32
  }
  func.func @transform_3(%arg0: i32) -> (i32, i32) {
    %c0_i32 = arith.constant 0 : i32
    %c0_i32_0 = arith.constant 0 : i32
    %c0_i32_1 = arith.constant 0 : i32
    return %c0_i32, %c0_i32_0 : i32, i32
  }
  func.func @transform_4(%arg0: i32) -> (i32, i32) {
    %c0_i32 = arith.constant 0 : i32
    %c0_i32_0 = arith.constant 0 : i32
    %c0_i32_1 = arith.constant 0 : i32
    return %c0_i32, %c0_i32_0 : i32, i32
  }
  func.func @transform_5(%arg0: i32) -> (i32, i32) {
    %c0_i32 = arith.constant 0 : i32
    %c0_i32_0 = arith.constant 0 : i32
    %c0_i32_1 = arith.constant 0 : i32
    return %c0_i32, %c0_i32_0 : i32, i32
  }
  func.func @transform_6(%arg0: i32) -> (i32, i32) {
    %c0_i32 = arith.constant 0 : i32
    %c0_i32_0 = arith.constant 0 : i32
    %c0_i32_1 = arith.constant 0 : i32
    return %c0_i32, %c0_i32_0 : i32, i32
  }
  func.func @transform_7(%arg0: i32) -> (i32, i32) {
    %c0_i32 = arith.constant 0 : i32
    %c0_i32_0 = arith.constant 0 : i32
    %c0_i32_1 = arith.constant 0 : i32
    return %c0_i32, %c0_i32_0 : i32, i32
  }
  func.func @transform_8(%arg0: i32) -> (i32, i32) {
    %c0_i32 = arith.constant 0 : i32
    %c0_i32_0 = arith.constant 0 : i32
    %c0_i32_1 = arith.constant 0 : i32
    return %c0_i32, %c0_i32_0 : i32, i32
  }
  func.func @transform_9(%arg0: i32) -> (i32, i32) {
    %c0_i32 = arith.constant 0 : i32
    %c0_i32_0 = arith.constant 0 : i32
    return %arg0, %c0_i32 : i32, i32
  }
}

</mosaic_0001>

<bundles_post_ra>
// kernel: resnet_controller_forward.1
= control target key start
LH: loop header
LB: loop body
LE: loop exit
PB: predicated region body
PF: predicated region fallthrough
CT: control target
= control target key end

     0   :  { %14 = vsyncpa [#allocation4], 0  ;;  %s915_s0 = inlined_call_operand.hbm [shape: f32[16,32], index: 0, kind: input, shape index: {}]   ;;  %s916_s1 = inlined_call_operand.hbm [shape: bf16[128,128], index: 1, kind: input, shape index: {}]   ;;  %s917_s2 = inlined_call_operand.hbm [shape: f32[1,128], index: 2, kind: input, shape index: {}]   ;;  %s918_s3 = inlined_call_operand.hbm [shape: bf16[128,128], index: 3, kind: input, shape index: {}]   ;;  %s919_s4 = inlined_call_operand.vmem [shape: f32[1,128], index: 4, kind: input, shape index: {}]   ;;  %s920_s5 = inlined_call_operand.hbm [shape: bf16[128,128], index: 5, kind: input, shape index: {}]   ;;  %s921_s6 = inlined_call_operand.vmem [shape: f32[1,128], index: 6, kind: input, shape index: {}]   ;;  %s922_s7 = inlined_call_operand.hbm [shape: bf16[128,128], index: 7, kind: input, shape index: {}]   ;;  %s923_s8 = inlined_call_operand.vmem [shape: f32[1,128], index: 8, kind: input, shape index: {}]   ;;  %s924_s9 = inlined_call_operand.vmem [shape: f32[16,8], index: 9, kind: output, shape index: {}]  }
   0x1   :  { %15 = vsyncpa [#allocation6], 0 }
   0x2   :  { %16 = vsyncpa [#allocation9], 0  ;;  %s35_s11 = sshll.u32 %s916_s1, 4  ;;  %s36_s11 = int_to_ptr.hbm [resolvable:$true] %s35_s11 }
   0x3   :  { %17 = vsyncpa [#allocation12], 0  ;;  %s809_s12 = smov [#allocation5]   ;;  %s59_s16 = sshll.u32 %s918_s3, 4  ;;  %s60_s16 = int_to_ptr.hbm [resolvable:$true] %s59_s16 }
   0x4   :  { %s37_s13 = sshll.u32 %s809_s12, 4  ;;  %s810_s17 = smov 64   ;;  %s38_s13 = int_to_ptr.vmem [resolvable:$true] %s37_s13 }
   0x5   :  { %s811_s18 = smov 4   ;;  %s812_s19 = smov [#allocation8]  }
   0x6   :  { %43 = dma.hbm_to_vmem [thread:$0]  %s36_s11, 1024, %s38_s13, [#allocation6], %s810_s17, %s810_s17, %s811_s18  }
   0x7   :  { %s61_s20 = sshll.u32 %s812_s19, 4  ;;  %s22_s22 = sshll.u32 %s915_s0, 4  ;;  %s62_s20 = int_to_ptr.vmem [resolvable:$true] %s61_s20  ;;  %s23_s22 = int_to_ptr.hbm [resolvable:$true] %s22_s22 }
   0x8   :  { %67 = dma.hbm_to_vmem [thread:$0]  %s60_s16, 1024, %s62_s20, [#allocation9], %s810_s17, %s810_s17, %s811_s18  }
   0x9   :  { %s813_s3 = smov [#allocation3]   ;;  %s49_s26 = sshll.u32 %s917_s2, 4  ;;  %s50_s26 = int_to_ptr.hbm [resolvable:$true] %s49_s26 }
   0xa   :  { %s24_s23 = sshll.u32 %s813_s3, 4  ;;  %s814_s27 = smov 128   ;;  %s25_s23 = int_to_ptr.vmem [resolvable:$true] %s24_s23 }
   0xb   :  { %s815_s28 = smov 8   ;;  %s816_s29 = smov [#allocation7]  }
   0xc   :  { %30 = dma.hbm_to_vmem [thread:$0]  %s23_s22, 256, %s25_s23, [#allocation4], %s814_s27, %s814_s27, %s815_s28  }
   0xd   :  { %s51_s30 = sshll.u32 %s816_s29, 4  ;;  %s74_s11 = sshll.u32 %s920_s5, 4  ;;  %s52_s30 = int_to_ptr.vmem [resolvable:$true] %s51_s30  ;;  %s75_s11 = int_to_ptr.hbm [resolvable:$true] %s74_s11 }
   0xe   :  { %54 = dma.hbm_to_vmem [thread:$0]  %s50_s26, 16, %s52_s30, [#allocation6]  }
   0xf   :  { %s89_s14 = sshll.u32 %s922_s7, 4  ;;  %s817_s15 = smov [#allocation10]   ;;  %s90_s14 = int_to_ptr.hbm [resolvable:$true] %s89_s14 }
  0x10   :  { %s76_s16 = sshll.u32 %s817_s15, 4  ;;  %s818_s2 = smov [#allocation11]   ;;  %s77_s16 = int_to_ptr.vmem [resolvable:$true] %s76_s16 }
  0x11   :  { %82 = dma.hbm_to_vmem [thread:$0]  %s75_s11, 1024, %s77_s16, [#allocation9], %s810_s17, %s810_s17, %s811_s18  }
  0x12   :  { %s91_s19 = sshll.u32 %s818_s2, 4  ;;  %s92_s19 = int_to_ptr.vmem [resolvable:$true] %s91_s19 }
  0x13   :  { %97 = dma.hbm_to_vmem [thread:$0]  %s90_s14, 1024, %s92_s19, [#allocation12], %s810_s17, %s810_s17, %s811_s18  }
  0x14   :  { %801 = dma.done.wait [#allocation4], 256  }
  0x15   :  { %802 = vsyncadd [#allocation4], 4294967040 }
  0x16   :  { %803 = dma.done.wait [#allocation6], 1040  }
  0x17   :  { %804 = vsyncadd [#allocation6], 4294966256 }
  0x18   :  { %805 = dma.done.wait [#allocation9], 2048  }
  0x19   :  { %806 = vsyncadd [#allocation9], 4294965248 }
  0x1a   :  { %807 = dma.done.wait [#allocation12], 1024  }
  0x1b   :  { %808 = vsyncadd [#allocation12], 4294966272  ;;  %v819_v0 = vmov 0.0   ;;  %v617_v1 = vld [vmem:[#allocation5 + $0x38] sm:$0xff]  ;;  %vm128_vm0 = vcmask 261120   ;;  %v616_v2 = vld [vmem:[#allocation5 + $0x30] sm:$0xff] }
  0x1c   :  { %124 = vst [vmem:[#allocation2] sm:$0xff] %v819_v0  ;;  %202 = vmatpush.bf16.msra.mxu0 %v617_v1  ;;  %v126_v3 = vld [vmem:[#allocation3] sm:$0xff]  ;;  %v127_v4 = vld [vmem:[#allocation3 + $0x8] sm:$0xff]  ;;  %v615_v7 = vld [vmem:[#allocation5 + $0x28] sm:$0xff]  ;;  %vm471_vm1 = vcmask 64512  }
  0x1d   :  { %125 = vst [vmem:[#allocation2 + $0x8] sm:$0xff] %v819_v0  ;;  %v625_v5 = vld [vmem:[#allocation8 + $0x38] sm:$0xff]  ;;  %v624_v6 = vld [vmem:[#allocation8 + $0x30] sm:$0xff]  ;;  %v623_v8 = vld [vmem:[#allocation8 + $0x28] sm:$0xff] }
  0x1e   :  { %129 = vst.msk [vmem:[#allocation2] sm:$0xff] %vm128_vm0, %v126_v3  ;;  %287 = vmatpush.bf16.msra.mxu1 %v625_v5  ;;  %v614_v9 = vld [vmem:[#allocation5 + $0x20] sm:$0xff]  ;;  %v613_v11 = vld [vmem:[#allocation5 + $0x18] sm:$0xff]  ;;  %v612_v12 = vld [vmem:[#allocation5 + $0x10] sm:$0xff] }
  0x1f   :  { %130 = vst.msk [vmem:[#allocation2 + $0x8] sm:$0xff] %vm128_vm0, %v127_v4  ;;  %v622_v10 = vld [vmem:[#allocation8 + $0x20] sm:$0xff]  ;;  %v621_v18 = vld [vmem:[#allocation8 + $0x18] sm:$0xff]  ;;  %v620_v19 = vld [vmem:[#allocation8 + $0x10] sm:$0xff] }
  0x20   :  { %203 = vmatpush.bf16.msra.mxu0 %v616_v2  ;;  %v611_v13 = vld [vmem:[#allocation5 + $0x8] sm:$0xff]  ;;  %v610_v14 = vld [vmem:[#allocation5] sm:$0xff]  ;;  %v632_v23 = vld [vmem:[#allocation10 + $0x30] sm:$0xff] }
  0x21   :  { %v619_v20 = vld [vmem:[#allocation8 + $0x8] sm:$0xff]  ;;  %v618_v21 = vld [vmem:[#allocation8] sm:$0xff]  ;;  %v633_v22 = vld [vmem:[#allocation10 + $0x38] sm:$0xff] }
  0x22   :  { %288 = vmatpush.bf16.msra.mxu1 %v624_v6  ;;  %372 = vmatpush.bf16.msra.mxu2 %v633_v22  ;;  %v631_v24 = vld [vmem:[#allocation10 + $0x28] sm:$0xff]  ;;  %v630_v25 = vld [vmem:[#allocation10 + $0x20] sm:$0xff]  ;;  %v653_v27 = vld [vmem:[#allocation7] ss:$0 sm:$0xff] }
  0x23   :  { %v629_v34 = vld [vmem:[#allocation10 + $0x18] sm:$0xff]  ;;  %v628_v35 = vld [vmem:[#allocation10 + $0x10] sm:$0xff]  ;;  %v627_v36 = vld [vmem:[#allocation10 + $0x8] sm:$0xff] }
  0x24   :  { %204 = vmatpush.bf16.msra.mxu0 %v615_v7  ;;  %v626_v37 = vld [vmem:[#allocation10] sm:$0xff]  ;;  %v641_v38 = vld [vmem:[#allocation11 + $0x38] sm:$0xff]  ;;  %v640_v39 = vld [vmem:[#allocation11 + $0x30] sm:$0xff] }
  0x25   :  { %v131_v15 = vld [vmem:[#allocation2] sm:$0xff]  ;;  %457 = vmatpush.bf16.msra.mxu3 %v641_v38  ;;  %v639_v40 = vld [vmem:[#allocation11 + $0x28] sm:$0xff]  ;;  %v636_v51 = vld [vmem:[#allocation11 + $0x10] sm:$0xff] }
  0x26   :  { %289 = vmatpush.bf16.msra.mxu1 %v623_v8  ;;  %v132_v16 = vld [vmem:[#allocation2 + $0x8] sm:$0xff]  ;;  %373 = vmatpush.bf16.msra.mxu2 %v632_v23  ;;  %v654_v43 = vld [vmem:[%s919_s4] ss:$0 sm:$0xff] }
  0x27   :  { %v133_v17 = vpack.c.bf16 %v132_v16, %v131_v15  ;;  %v638_v41 = vld [vmem:[#allocation11 + $0x20] sm:$0xff]  ;;  %v637_v50 = vld [vmem:[#allocation11 + $0x18] sm:$0xff]  ;;  %v635_v52 = vld [vmem:[#allocation11 + $0x8] sm:$0xff] }
  0x28   :  { %205 = vmatpush.bf16.msra.mxu0 %v614_v9  ;;  %v634_v53 = vld [vmem:[#allocation11] sm:$0xff]  ;;  %v655_v55 = vld [vmem:[%s921_s6] ss:$0 sm:$0xff] }
  0x29   :  { %458 = vmatpush.bf16.msra.mxu3 %v640_v39  ;;  %v656_v62 = vld [vmem:[%s923_s8] ss:$0 sm:$0xff] }
  0x2a   :  { %290 = vmatpush.bf16.msra.mxu1 %v622_v10  ;;  %374 = vmatpush.bf16.msra.mxu2 %v631_v24 }
  0x2c   :  { %206 = vmatpush.bf16.msra.mxu0 %v613_v11 }
  0x2d   :  { %459 = vmatpush.bf16.msra.mxu3 %v639_v40 }
  0x2e   :  { %291 = vmatpush.bf16.msra.mxu1 %v621_v18  ;;  %375 = vmatpush.bf16.msra.mxu2 %v630_v25 }
  0x30   :  { %207 = vmatpush.bf16.msra.mxu0 %v612_v12 }
  0x31   :  { %460 = vmatpush.bf16.msra.mxu3 %v638_v41 }
  0x32   :  { %292 = vmatpush.bf16.msra.mxu1 %v620_v19  ;;  %376 = vmatpush.bf16.msra.mxu2 %v629_v34 }
  0x34   :  { %208 = vmatpush.bf16.msra.mxu0 %v611_v13 }
  0x35   :  { %461 = vmatpush.bf16.msra.mxu3 %v637_v50 }
  0x36   :  { %293 = vmatpush.bf16.msra.mxu1 %v619_v20  ;;  %377 = vmatpush.bf16.msra.mxu2 %v628_v35 }
  0x38   :  { %209 = vmatpush.bf16.msra.mxu0 %v610_v14 }
  0x39   :  { %462 = vmatpush.bf16.msra.mxu3 %v636_v51 }
  0x3a   :  { %294 = vmatpush.bf16.msra.mxu1 %v618_v21  ;;  %378 = vmatpush.bf16.msra.mxu2 %v627_v36 }
  0x3b   :  { %210 = vmatmul.bf16.vlgmr.msra.gmra.mxu0 %v133_v17 }
  0x3d   :  { %463 = vmatpush.bf16.msra.mxu3 %v635_v52 }
  0x3e   :  { %379 = vmatpush.bf16.msra.mxu2 %v626_v37 }
  0x41   :  { %464 = vmatpush.bf16.msra.mxu3 %v634_v53 }
  0xb8   :  { %v211_v26 = vpop.f32.mrf.mxu0 }
  0xb9   :  { %v212_v28 = vadd.f32 %v653_v27, %v211_v26 }
  0xbb   :  { %v216_v31 = vmax.f32 %v212_v28, 0.0 }
  0xc0   :  { %v213_v29 = vpop.f32.mrf.mxu0 }
  0xc1   :  { %v214_v30 = vadd.f32 %v653_v27, %v213_v29 }
  0xc3   :  { %v217_v32 = vmax.f32 %v214_v30, 0.0 }
  0xc5   :  { %v218_v33 = vpack.c.bf16 %v217_v32, %v216_v31 }
  0xc7   :  { %295 = vmatmul.bf16.vlgmr.msra.gmra.mxu1 %v218_v33 }
 0x144   :  { %v296_v42 = vpop.f32.mrf.mxu1 }
 0x145   :  { %v297_v44 = vadd.f32 %v654_v43, %v296_v42 }
 0x147   :  { %v301_v47 = vadd.f32 %v297_v44, %v131_v15 }
 0x14c   :  { %v298_v45 = vpop.f32.mrf.mxu1 }
 0x14d   :  { %v299_v46 = vadd.f32 %v654_v43, %v298_v45 }
 0x14f   :  { %v302_v48 = vadd.f32 %v299_v46, %v132_v16 }
 0x151   :  { %v303_v49 = vpack.c.bf16 %v302_v48, %v301_v47 }
 0x153   :  { %380 = vmatmul.bf16.vlgmr.msra.gmra.mxu2 %v303_v49 }
 0x1d6   :  { %v381_v54 = vpop.f32.mrf.mxu2 }
 0x1d7   :  { %v382_v56 = vadd.f32 %v655_v55, %v381_v54 }
 0x1d9   :  { %v386_v59 = vmax.f32 %v382_v56, 0.0 }
 0x1de   :  { %v383_v57 = vpop.f32.mrf.mxu2 }
 0x1df   :  { %v384_v58 = vadd.f32 %v655_v55, %v383_v57 }
 0x1e1   :  { %v387_v60 = vmax.f32 %v384_v58, 0.0 }
 0x1e3   :  { %v388_v61 = vpack.c.bf16 %v387_v60, %v386_v59 }
 0x1e5   :  { %465 = vmatmul.bf16.vlgmr.msra.gmra.mxu3 %v388_v61 }
 0x268   :  { %v466_v63 = vpop.f32.mrf.mxu3 }
 0x269   :  { %v467_v0 = vadd.f32 %v656_v62, %v466_v63 }
 0x26b   :  { %472 = vst.msk [vmem:[%s924_s9] sm:$0xff] %vm471_vm1, %v467_v0 }
 0x270   :  { %v468_v1 = vpop.f32.mrf.mxu3 }
 0x271   :  { %v469_v2 = vadd.f32 %v656_v62, %v468_v1 }
 0x273   :  { %473 = vst.msk [vmem:[%s924_s9 + $0x8] sm:$0xff] %vm471_vm1, %v469_v2 }
 0x274   :  { %478 = vsyncpa [#allocation4], 1 }
 0x275   :  { %479 = vsyncpa [#allocation6], 1 }
 0x276   :  { %480 = vsyncpa [#allocation9], 1 }
 0x277   :  { %481 = vsyncpa [#allocation12], 1 }

</bundles_post_ra>
